<compile_context>
chip_gen: v7x
topology: tpu7x:2x2x1
jax: 0.10.0
libtpu: 0.0.40
codegen_flags: <defaults>
</compile_context>

<pallas_src>
import jax
import jax.numpy as jnp
from jax.experimental import pallas as pl
from jax.experimental.pallas import tpu as pltpu


def _round_up(x, m):
    return (x + m - 1) // m * m


def _vmem_capacity_bytes():
    try:
        return int(pltpu.get_tpu_info().vmem_capacity_bytes)
    except Exception:
        return 64 << 20  # conservative fallback (v7x physical per-TC VMEM)


def _make_vae_kernel(n_z_pad):
    def kernel(x_ref, w1_ref, b1_ref, w2_ref, b2_ref, w3_ref, eps_ref,
               recon_ref, mulv_ref):
        # encode hidden: h = relu(x @ W1 + b1)   (f32 accumulation on the MXU)
        h = jnp.dot(x_ref[...], w1_ref[...],
                    preferred_element_type=jnp.float32) + b1_ref[...]
        h = jnp.maximum(h, 0.0)

        # fused, lane-padded heads: [mu | logvar] = h @ [W21|W22] + [b21|b22]
        mulv = jnp.dot(h.astype(w2_ref.dtype), w2_ref[...],
                       preferred_element_type=jnp.float32) + b2_ref[...]
        mu = mulv[:, :n_z_pad]        # 128-lane aligned split: zero-cost views
        logvar = mulv[:, n_z_pad:]

        # reparameterize in f32 on VPU/EUP: z = eps * exp(0.5*logvar) + mu
        # (padded lanes: logvar=0 -> std=1, eps=0, mu=0 -> z=0, harmless)
        z = eps_ref[...] * jnp.exp(0.5 * logvar) + mu

        # decode: recon = relu(z) @ W3   (fc3 bias=False, no output activation)
        recon = jnp.dot(jnp.maximum(z, 0.0).astype(w3_ref.dtype), w3_ref[...],
                        preferred_element_type=jnp.float32)

        recon_ref[...] = recon.astype(recon_ref.dtype)
        mulv_ref[...] = mulv.astype(mulv_ref.dtype)   # lane-dense (tile_b, 2*Nz_pad)

    return kernel


def prepare_vae_params(params, *, matmul_dtype=jnp.float32):
    """One-time parameter prep (hoisted out of the per-call forward path).

    * Fuses the two head projections into one (n_hidden, 2*Nz_pad) weight with
      Nz_pad = round_up(n_z, 128): mu in lanes [0, Nz_pad), logvar in [Nz_pad, 2*Nz_pad).
    * Zero-pads W3's contraction dim to Nz_pad.
    * Optionally casts matmul operands to bf16 here (not per grid step in the kernel).
      Biases stay f32 since they are added to f32 accumulators.
    """
    n_input, n_hidden = params["w1"].shape
    n_z = params["w21"].shape[1]
    n_z_pad = _round_up(n_z, 128)
    pad = n_z_pad - n_z

    w2 = jnp.concatenate([jnp.pad(params["w21"], ((0, 0), (0, pad))),
                          jnp.pad(params["w22"], ((0, 0), (0, pad)))], axis=1)
    b2 = jnp.concatenate([jnp.pad(params["b21"], ((0, 0), (0, pad))),
                          jnp.pad(params["b22"], ((0, 0), (0, pad)))], axis=1)
    w3 = jnp.pad(params["w3"], ((0, pad), (0, 0)))

    return {
        "w1": params["w1"].astype(matmul_dtype),      # (n_input, n_hidden)
        "b1": params["b1"].astype(jnp.float32),       # (1, n_hidden)
        "w2": w2.astype(matmul_dtype),                # (n_hidden, 2*Nz_pad)
        "b2": b2.astype(jnp.float32),                 # (1, 2*Nz_pad)
        "w3": w3.astype(matmul_dtype),                # (Nz_pad, n_input)
        "n_input": n_input,
        "n_hidden": n_hidden,
        "n_z": n_z,
        "n_z_pad": n_z_pad,
        "matmul_dtype": jnp.dtype(matmul_dtype),
    }


def _pick_tile_b(B, n_input, n_z_pad, in_itemsize, out_itemsize, weight_bytes,
                 vmem_budget, max_tile=4096):
    # Pipelined (double-buffered) VMEM bytes per batch row.
    row_bytes = (n_input * in_itemsize            # x tile
                 + n_z_pad * 4                    # eps tile (f32)
                 + n_input * out_itemsize         # recon tile
                 + 2 * n_z_pad * out_itemsize)    # mu||logvar tile
    avail = vmem_budget - 2 * weight_bytes        # resident weights (default 2-deep buffers)
    avail = max(avail, vmem_budget // 4)
    tile_b = min(max_tile, avail // (2 * row_bytes), _round_up(B, 8))
    tile_b = max(8, (tile_b // 8) * 8)
    # v7x megacore: give the "parallel" batch axis >= 2 grid steps when B allows,
    # so the second TensorCore has work (negligible cost on single-TC v5e/v6e).
    if B >= 16:
        tile_b = min(tile_b, _round_up(-(-B // 2), 8))
    # Balance tiles to minimize batch padding: fix the tile count, then size evenly.
    num_tiles = max(1, -(-B // tile_b))
    tile_b = _round_up(-(-B // num_tiles), 8)
    return tile_b


def vae_forward(x, prep, eps, *, tile_b=None, out_dtype=jnp.float32):
    """x: anything flattening to (-1, n_input); eps: (B, n_z) standard normal.

    prep: output of prepare_vae_params().  Returns (recon, mu, logvar), matching
    VAE.forward of the PyTorch module.  out_dtype=bf16 halves output HBM writeback.
    """
    n_input, n_hidden = prep["n_input"], prep["n_hidden"]
    n_z, n_z_pad = prep["n_z"], prep["n_z_pad"]
    matmul_dtype = prep["matmul_dtype"]

    # x is cast in the wrapper (halves the dominant HBM input stream for bf16).
    xf = x.reshape(-1, n_input).astype(matmul_dtype)
    B = xf.shape[0]
    # eps stays f32 (reparameterize math is f32); lane-pad to n_z_pad with zeros.
    eps = eps.reshape(B, n_z).astype(jnp.float32)
    eps = jnp.pad(eps, ((0, 0), (0, n_z_pad - n_z)))
    # TODO(synk): eps could be generated in-kernel (pltpu.prng_seed + pltpu.stateful_normal)
    # to drop this HBM stream; kept as an explicit input to match torch.randn_like semantics.

    in_itemsize = jnp.dtype(matmul_dtype).itemsize
    out_itemsize = jnp.dtype(out_dtype).itemsize
    weight_bytes = (n_input * n_hidden * in_itemsize + n_hidden * 4
                    + n_hidden * 2 * n_z_pad * in_itemsize + 2 * n_z_pad * 4
                    + n_z_pad * n_input * in_itemsize)

    vmem_budget = (_vmem_capacity_bytes() * 3) // 4   # headroom for compiler scratch
    if tile_b is None:
        tile_b = _pick_tile_b(B, n_input, n_z_pad, in_itemsize, out_itemsize,
                              weight_bytes, vmem_budget)
    tile_b = max(8, _round_up(tile_b, 8))

    Bp = _round_up(B, tile_b)
    if Bp != B:
        xf = jnp.pad(xf, ((0, Bp - B), (0, 0)))
        eps = jnp.pad(eps, ((0, Bp - B), (0, 0)))

    grid = (Bp // tile_b,)
    kernel = _make_vae_kernel(n_z_pad)

    recon, mulv = pl.pallas_call(
        kernel,
        out_shape=(
            jax.ShapeDtypeStruct((Bp, n_input), out_dtype),
            jax.ShapeDtypeStruct((Bp, 2 * n_z_pad), out_dtype),
        ),
        grid=grid,
        in_specs=[
            pl.BlockSpec((tile_b, n_input), lambda i: (i, 0)),        # x (batch-tiled)
            # Resident weights/biases: constant index_map keeps them in VMEM across the
            # grid.  (pipeline_mode=pl.Buffered(1) would halve their footprint, but with
            # n_hidden=10 they total well under 1 MiB, so it is not worth the knob.)
            pl.BlockSpec((n_input, n_hidden), lambda i: (0, 0)),      # W1
            pl.BlockSpec((1, n_hidden), lambda i: (0, 0)),            # b1
            pl.BlockSpec((n_hidden, 2 * n_z_pad), lambda i: (0, 0)),  # [W21|W22] (lane-padded)
            pl.BlockSpec((1, 2 * n_z_pad), lambda i: (0, 0)),         # [b21|b22]
            pl.BlockSpec((n_z_pad, n_input), lambda i: (0, 0)),       # W3 (row-padded)
            pl.BlockSpec((tile_b, n_z_pad), lambda i: (i, 0)),        # eps (batch-tiled)
        ],
        out_specs=(
            pl.BlockSpec((tile_b, n_input), lambda i: (i, 0)),        # recon
            pl.BlockSpec((tile_b, 2 * n_z_pad), lambda i: (i, 0)),    # mu || logvar (lane-dense)
        ),
        compiler_params=pltpu.CompilerParams(
            dimension_semantics=("parallel",),
            vmem_limit_bytes=int(vmem_budget),
        ),
    )(xf, prep["w1"], prep["b1"], prep["w2"], prep["b2"], prep["w3"], eps)

    recon = recon[:B]
    mu = mulv[:B, :n_z]
    logvar = mulv[:B, n_z_pad:n_z_pad + n_z]
    return recon, mu, logvar


def init_vae_params(key, n_input, n_z, n_hidden=10):
    """Deterministic init mimicking PyTorch Linear default (uniform +/- 1/sqrt(fan_in)).
    Weights are stored transposed: (in_features, out_features)."""
    ks = jax.random.split(key, 7)

    def unif(k, shape, fan_in):
        bound = 1.0 / jnp.sqrt(jnp.float32(fan_in))
        return jax.random.uniform(k, shape, jnp.float32, -bound, bound)

    return {
        "w1":  unif(ks[0], (n_input, n_hidden), n_input),
        "b1":  unif(ks[1], (1, n_hidden), n_input),
        "w21": unif(ks[2], (n_hidden, n_z), n_hidden),
        "b21": unif(ks[3], (1, n_z), n_hidden),
        "w22": unif(ks[4], (n_hidden, n_z), n_hidden),
        "b22": unif(ks[5], (1, n_z), n_hidden),
        "w3":  unif(ks[6], (n_z, n_input), n_z),   # fc3 bias=False
    }


if __name__ == "__main__":
    n_input, n_z, n_hidden = 16, 8, 10

    key = jax.random.PRNGKey(0)
    k_param, k_x, k_eps = jax.random.split(key, 3)

    params = init_vae_params(k_param, n_input, n_z, n_hidden)

    # x flattens via view(-1, n_input): (2, 4, 16) -> (8, 16)
    x = jax.random.normal(k_x, (2, 4, n_input), dtype=jnp.float32)
    B = x.size // n_input
    eps = jax.random.normal(k_eps, (B, n_z), dtype=jnp.float32)

    # reference in plain JAX (matches the PyTorch module semantics)
    xf = x.reshape(-1, n_input)
    h_ref = jnp.maximum(xf @ params["w1"] + params["b1"], 0.0)
    mu_ref = h_ref @ params["w21"] + params["b21"]
    lv_ref = h_ref @ params["w22"] + params["b22"]
    z_ref = eps * jnp.exp(0.5 * lv_ref) + mu_ref
    recon_ref = jnp.maximum(z_ref, 0.0) @ params["w3"]

    # ---- f32 path (exact) ----
    prep_f32 = prepare_vae_params(params, matmul_dtype=jnp.float32)
    recon, mu, logvar = vae_forward(x, prep_f32, eps)
    jax.block_until_ready((recon, mu, logvar))

    assert recon.shape == (B, n_input) and mu.shape == (B, n_z) and logvar.shape == (B, n_z)
    assert jnp.allclose(recon, recon_ref, atol=1e-5)
    assert jnp.allclose(mu, mu_ref, atol=1e-5)
    assert jnp.allclose(logvar, lv_ref, atol=1e-5)

    # ---- bf16 matmul-operand / bf16-output path (loose tolerance; accum + reparam stay f32) ----
    prep_bf16 = prepare_vae_params(params, matmul_dtype=jnp.bfloat16)
    recon_b, mu_b, lv_b = vae_forward(x, prep_bf16, eps, out_dtype=jnp.bfloat16)
    jax.block_until_ready((recon_b, mu_b, lv_b))
    assert jnp.allclose(recon_b.astype(jnp.float32), recon_ref, atol=2.5e-1, rtol=2.5e-1)
    assert jnp.allclose(mu_b.astype(jnp.float32), mu_ref, atol=2.5e-1, rtol=2.5e-1)
    assert jnp.allclose(lv_b.astype(jnp.float32), lv_ref, atol=2.5e-1, rtol=2.5e-1)

    print("KERNEL_OK")
</pallas_src>

<mosaic_0001>
module attributes {stable_mosaic.version = 11 : i64} {
  func.func @kernel(%arg0: i32, %arg1: memref<8x16xf32, #tpu.memory_space<vmem>>, %arg2: memref<16x10xf32, #tpu.memory_space<vmem>>, %arg3: memref<1x10xf32, #tpu.memory_space<vmem>>, %arg4: memref<10x256xf32, #tpu.memory_space<vmem>>, %arg5: memref<1x256xf32, #tpu.memory_space<vmem>>, %arg6: memref<128x16xf32, #tpu.memory_space<vmem>>, %arg7: memref<8x128xf32, #tpu.memory_space<vmem>>, %arg8: memref<8x16xf32, #tpu.memory_space<vmem>>, %arg9: memref<8x256xf32, #tpu.memory_space<vmem>>) attributes {dimension_semantics = [#tpu.dimension_semantics<parallel>], iteration_bounds = array<i64: 1>, scalar_prefetch = 0 : i64, scratch_operands = 0 : i64, tpu.core_type = #tpu.core_type<tc>, window_params = [{transform_indices = @transform_0, window_bounds = array<i64: 8, 16>}, {pipeline_mode = #tpu.pipeline_mode<synchronous>, transform_indices = @transform_1, window_bounds = array<i64: 16, 10>}, {pipeline_mode = #tpu.pipeline_mode<synchronous>, transform_indices = @transform_2, window_bounds = array<i64: 1, 10>}, {pipeline_mode = #tpu.pipeline_mode<synchronous>, transform_indices = @transform_3, window_bounds = array<i64: 10, 256>}, {pipeline_mode = #tpu.pipeline_mode<synchronous>, transform_indices = @transform_4, window_bounds = array<i64: 1, 256>}, {pipeline_mode = #tpu.pipeline_mode<synchronous>, transform_indices = @transform_5, window_bounds = array<i64: 128, 16>}, {transform_indices = @transform_6, window_bounds = array<i64: 8, 128>}, {transform_indices = @transform_7, window_bounds = array<i64: 8, 16>}, {transform_indices = @transform_8, window_bounds = array<i64: 8, 256>}]} {
    %c0 = arith.constant 0 : index
    %c0_0 = arith.constant 0 : index
    %0 = vector.load %arg1[%c0, %c0_0] : memref<8x16xf32, #tpu.memory_space<vmem>>, vector<8x16xf32>
    %c0_1 = arith.constant 0 : index
    %c0_2 = arith.constant 0 : index
    %1 = vector.load %arg2[%c0_1, %c0_2] : memref<16x10xf32, #tpu.memory_space<vmem>>, vector<16x10xf32>
    %cst = arith.constant dense<0.000000e+00> : vector<8x10xf32>
    %2 = tpu.matmul %0, %1, %cst {dimension_numbers = #tpu.dot_dimension_numbers<[1], [0], [0], [1], [0, 0, 1, 1], [], []>} : vector<8x16xf32>, vector<16x10xf32>, vector<8x10xf32> -> vector<8x10xf32>
    %c0_3 = arith.constant 0 : index
    %c0_4 = arith.constant 0 : index
    %3 = vector.load %arg3[%c0_3, %c0_4] : memref<1x10xf32, #tpu.memory_space<vmem>>, vector<1x10xf32>
    %4 = vector.broadcast %3 : vector<1x10xf32> to vector<8x10xf32>
    %5 = arith.addf %2, %4 : vector<8x10xf32>
    %cst_5 = arith.constant 0.000000e+00 : f32
    %6 = vector.broadcast %cst_5 : f32 to vector<8x10xf32>
    %7 = arith.maximumf %5, %6 : vector<8x10xf32>
    %c0_6 = arith.constant 0 : index
    %c0_7 = arith.constant 0 : index
    %8 = vector.load %arg4[%c0_6, %c0_7] : memref<10x256xf32, #tpu.memory_space<vmem>>, vector<10x256xf32>
    %cst_8 = arith.constant dense<0.000000e+00> : vector<8x256xf32>
    %9 = tpu.matmul %7, %8, %cst_8 {dimension_numbers = #tpu.dot_dimension_numbers<[1], [0], [0], [1], [0, 0, 1, 1], [], []>} : vector<8x10xf32>, vector<10x256xf32>, vector<8x256xf32> -> vector<8x256xf32>
    %c0_9 = arith.constant 0 : index
    %c0_10 = arith.constant 0 : index
    %10 = vector.load %arg5[%c0_9, %c0_10] : memref<1x256xf32, #tpu.memory_space<vmem>>, vector<1x256xf32>
    %11 = vector.broadcast %10 : vector<1x256xf32> to vector<8x256xf32>
    %12 = arith.addf %9, %11 : vector<8x256xf32>
    %13 = vector.extract_strided_slice %12 {offsets = [0, 0], sizes = [8, 128], strides = [1, 1]} : vector<8x256xf32> to vector<8x128xf32>
    %14 = vector.extract_strided_slice %12 {offsets = [0, 128], sizes = [8, 128], strides = [1, 1]} : vector<8x256xf32> to vector<8x128xf32>
    %c0_11 = arith.constant 0 : index
    %c0_12 = arith.constant 0 : index
    %15 = vector.load %arg7[%c0_11, %c0_12] : memref<8x128xf32, #tpu.memory_space<vmem>>, vector<8x128xf32>
    %cst_13 = arith.constant 5.000000e-01 : f32
    %16 = vector.broadcast %cst_13 : f32 to vector<8x128xf32>
    %17 = arith.mulf %16, %14 : vector<8x128xf32>
    %18 = math.exp %17 : vector<8x128xf32>
    %19 = arith.mulf %15, %18 : vector<8x128xf32>
    %20 = arith.addf %19, %13 : vector<8x128xf32>
    %cst_14 = arith.constant 0.000000e+00 : f32
    %21 = vector.broadcast %cst_14 : f32 to vector<8x128xf32>
    %22 = arith.maximumf %20, %21 : vector<8x128xf32>
    %c0_15 = arith.constant 0 : index
    %c0_16 = arith.constant 0 : index
    %23 = vector.load %arg6[%c0_15, %c0_16] : memref<128x16xf32, #tpu.memory_space<vmem>>, vector<128x16xf32>
    %cst_17 = arith.constant dense<0.000000e+00> : vector<8x16xf32>
    %24 = tpu.matmul %22, %23, %cst_17 {dimension_numbers = #tpu.dot_dimension_numbers<[1], [0], [0], [1], [0, 0, 1, 1], [], []>} : vector<8x128xf32>, vector<128x16xf32>, vector<8x16xf32> -> vector<8x16xf32>
    %c0_18 = arith.constant 0 : index
    %c0_19 = arith.constant 0 : index
    %25 = vector.load %arg8[%c0_18, %c0_19] : memref<8x16xf32, #tpu.memory_space<vmem>>, vector<8x16xf32>
    tpu.vector_store %arg8[%c0_18, %c0_19], %24 {strides = array<i32>} : memref<8x16xf32, #tpu.memory_space<vmem>>, vector<8x16xf32>,
    %c0_20 = arith.constant 0 : index
    %c0_21 = arith.constant 0 : index
    %26 = vector.load %arg9[%c0_20, %c0_21] : memref<8x256xf32, #tpu.memory_space<vmem>>, vector<8x256xf32>
    tpu.vector_store %arg9[%c0_20, %c0_21], %12 {strides = array<i32>} : memref<8x256xf32, #tpu.memory_space<vmem>>, vector<8x256xf32>,
    return
  }
  func.func @transform_0(%arg0: i32) -> (i32, i32) {
    %c0_i32 = arith.constant 0 : i32
    %c0_i32_0 = arith.constant 0 : i32
    return %arg0, %c0_i32 : i32, i32
  }
  func.func @transform_1(%arg0: i32) -> (i32, i32) {
    %c0_i32 = arith.constant 0 : i32
    %c0_i32_0 = arith.constant 0 : i32
    %c0_i32_1 = arith.constant 0 : i32
    return %c0_i32, %c0_i32_0 : i32, i32
  }
  func.func @transform_2(%arg0: i32) -> (i32, i32) {
    %c0_i32 = arith.constant 0 : i32
    %c0_i32_0 = arith.constant 0 : i32
    %c0_i32_1 = arith.constant 0 : i32
    return %c0_i32, %c0_i32_0 : i32, i32
  }
  func.func @transform_3(%arg0: i32) -> (i32, i32) {
    %c0_i32 = arith.constant 0 : i32
    %c0_i32_0 = arith.constant 0 : i32
    %c0_i32_1 = arith.constant 0 : i32
    return %c0_i32, %c0_i32_0 : i32, i32
  }
  func.func @transform_4(%arg0: i32) -> (i32, i32) {
    %c0_i32 = arith.constant 0 : i32
    %c0_i32_0 = arith.constant 0 : i32
    %c0_i32_1 = arith.constant 0 : i32
    return %c0_i32, %c0_i32_0 : i32, i32
  }
  func.func @transform_5(%arg0: i32) -> (i32, i32) {
    %c0_i32 = arith.constant 0 : i32
    %c0_i32_0 = arith.constant 0 : i32
    %c0_i32_1 = arith.constant 0 : i32
    return %c0_i32, %c0_i32_0 : i32, i32
  }
  func.func @transform_6(%arg0: i32) -> (i32, i32) {
    %c0_i32 = arith.constant 0 : i32
    %c0_i32_0 = arith.constant 0 : i32
    return %arg0, %c0_i32 : i32, i32
  }
  func.func @transform_7(%arg0: i32) -> (i32, i32) {
    %c0_i32 = arith.constant 0 : i32
    %c0_i32_0 = arith.constant 0 : i32
    return %arg0, %c0_i32 : i32, i32
  }
  func.func @transform_8(%arg0: i32) -> (i32, i32) {
    %c0_i32 = arith.constant 0 : i32
    %c0_i32_0 = arith.constant 0 : i32
    return %arg0, %c0_i32 : i32, i32
  }
}

</mosaic_0001>

<bundles_post_ra>
// kernel: tpu_custom_call.1
= control target key start
LH: loop header
LB: loop body
LE: loop exit
PB: predicated region body
PF: predicated region fallthrough
CT: control target
= control target key end

     0   :  { %14 = vsyncpa [#allocation3], 0  ;;  %v493_v2 = vmov 0.0|0.0   ;;  %vm494_vm0 = vmmov 0   ;;  %v495_v4 = vmov 0.0   ;;  %s657_s0 = inlined_call_operand.vmem [shape: f32[8,16], index: 0, kind: input, shape index: {}]   ;;  %s658_s1 = inlined_call_operand.vmem [shape: f32[16,10], index: 1, kind: input, shape index: {}]   ;;  %s659_s2 = inlined_call_operand.vmem [shape: f32[1,10], index: 2, kind: input, shape index: {}]   ;;  %s660_s3 = inlined_call_operand.vmem [shape: f32[10,256], index: 3, kind: input, shape index: {}]   ;;  %s661_s4 = inlined_call_operand.vmem [shape: f32[1,256], index: 4, kind: input, shape index: {}]   ;;  %s662_s5 = inlined_call_operand.vmem [shape: f32[128,16], index: 5, kind: input, shape index: {}]   ;;  %s663_s6 = inlined_call_operand.vmem [shape: f32[8,128], index: 6, kind: input, shape index: {}]   ;;  %s664_s7 = inlined_call_operand.hbm [shape: f32[8,16], index: 7, kind: output, shape index: {0}]   ;;  %s665_s8 = inlined_call_operand.hbm [shape: f32[8,256], index: 8, kind: output, shape index: {1}]  }
   0x1   :  { %v31_v0 = vld [vmem:[%s658_s1] sm:$0xff]  ;;  %v32_v1 = vld [vmem:[%s658_s1 + $0x8] sm:$0xff]  ;;  %404 = vmatprep.subr.bf16.mxu1 %v493_v2  ;;  %366 = vmatprep.mubr.msk.f32.mxu1 %vm494_vm0, %v495_v4 }
   0x2   :  { %v405_v3 = vpack.c.bf16 %v32_v1, %v31_v0 }
   0x3   :  { %15 = vsyncpa [#allocation5], 0  ;;  %413 = vmatprep.subr.bf16.mxu0 %v493_v2  ;;  %401 = vmatprep.mubr.msk.f32.mxu0 %vm494_vm0, %v495_v4  ;;  %v30_v5 = vld [vmem:[%s657_s0] sm:$0xff]  ;;  %vm40_vm1 = vcmask 130048   ;;  %v116_v6 = vld [vmem:[%s660_s3 + $0x8] sm:$0xff]  ;;  %vm135_vm2 = vcmask 1041408   ;;  %v121_v41 = vlaneseq }
   0x4   :  { %406 = vmatpush3.bf16.msra.mxu1 %v405_v3  ;;  %v118_v7 = vld [vmem:[%s660_s3 + $0x18] sm:$0x3]  ;;  %v115_v9 = vld [vmem:[%s660_s3] sm:$0xff]  ;;  %v117_v10 = vld [vmem:[%s660_s3 + $0x10] sm:$0x3]  ;;  %vm496_vm3 = vmmov 1  }
   0x5   :  { %v407_v8 = vpack.c.bf16 %v118_v7, %v116_v6  ;;  %vm408_vm4 = vmpackc.low %vm135_vm2, %vm496_vm3  ;;  %v410_v11 = vpack.c.bf16 %v117_v10, %v115_v9  ;;  %v220_v12 = vld [vmem:[%s662_s5] sm:$0xff]  ;;  %v221_v13 = vld [vmem:[%s662_s5 + $0x8] sm:$0xff]  ;;  %vm131_vm5 = vcmask 80896   ;;  %v122_v42 = vshrl.u32 %v121_v41, 7 }
   0x6   :  { %v222_v14 = vld [vmem:[%s662_s5 + $0x10] sm:$0xff]  ;;  %v414_v15 = vpack.c.bf16 %v221_v13, %v220_v12  ;;  %v223_v16 = vld [vmem:[%s662_s5 + $0x18] sm:$0xff]  ;;  %v337_v18 = vld [vmem:[%s659_s2] ss:$0 sm:$0xff] }
   0x7   :  { %367 = vmatmul.mubr.msk.f32.vlgmr.msra.gmra.mrb[0].mxu1 %vm40_vm1, %v30_v5  ;;  %409 = vmatprep.subr.msk.bf16.mxu1 %vm408_vm4, %v407_v8  ;;  %v417_v17 = vpack.c.bf16 %v223_v16, %v222_v14  ;;  %v224_v23 = vld [vmem:[%s662_s5 + $0x20] sm:$0xff]  ;;  %v225_v24 = vld [vmem:[%s662_s5 + $0x28] sm:$0xff]  ;;  %v226_v26 = vld [vmem:[%s662_s5 + $0x30] sm:$0xff]  ;;  %v123_v43 = vsub.s32 0, %v122_v42  ;;  %v127_v45 = vsub.s32 1, %v122_v42 }
   0x8   :  { %206 = vmatprep.mubr.f32.mxu1 %v495_v4  ;;  %412 = vmatpush1.bf16.msk.msra.mxu1 %vm408_vm4, %v410_v11  ;;  %v420_v25 = vpack.c.bf16 %v225_v24, %v224_v23  ;;  %v227_v27 = vld [vmem:[%s662_s5 + $0x38] sm:$0xff]  ;;  %v228_v29 = vld [vmem:[%s662_s5 + $0x40] sm:$0xff]  ;;  %v229_v30 = vld [vmem:[%s662_s5 + $0x48] sm:$0xff] }
   0x9   :  { %415 = vmatpush3.bf16.msra.mxu0 %v414_v15  ;;  %v423_v28 = vpack.c.bf16 %v227_v27, %v226_v26  ;;  %v426_v31 = vpack.c.bf16 %v229_v30, %v228_v29  ;;  %v230_v32 = vld [vmem:[%s662_s5 + $0x50] sm:$0xff]  ;;  %v231_v33 = vld [vmem:[%s662_s5 + $0x58] sm:$0xff]  ;;  %v232_v35 = vld [vmem:[%s662_s5 + $0x60] sm:$0xff] }
   0xa   :  { %416 = vmatprep.subr.bf16.mxu0 %v493_v2  ;;  %v429_v34 = vpack.c.bf16 %v231_v33, %v230_v32  ;;  %v233_v36 = vld [vmem:[%s662_s5 + $0x68] sm:$0xff]  ;;  %v234_v38 = vld [vmem:[%s662_s5 + $0x70] sm:$0xff]  ;;  %v235_v39 = vld [vmem:[%s662_s5 + $0x78] sm:$0xff] }
   0xb   :  { %v432_v37 = vpack.c.bf16 %v233_v36, %v232_v35  ;;  %v435_v40 = vpack.c.bf16 %v235_v39, %v234_v38  ;;  %v119_v44 = vld [vmem:[%s661_s4] sm:$0x3]  ;;  %s497_s4 = smov [#allocation4]  }
   0xc   :  { %v124_v46 = vrot.slane %v119_v44, %v123_v43  ;;  %v128_v47 = vrot.slane %v119_v44, %v127_v45  ;;  %v213_v54 = vld [vmem:[%s663_s6] sm:$0xff]  ;;  %s325_s27 = sshll.u32 %s497_s4, 4  ;;  %s326_s27 = int_to_ptr.vmem [resolvable:$true] %s325_s27 }
   0xd   :  { %418 = vmatpush3.bf16.msra.mxu0 %v417_v17  ;;  %s445_s28 = scalar_lea.vmem %s326_s27, 256  ;;  %p450_p1 = scmp.lt.s32.totalorder %s326_s27, %s326_s27 }
   0xe   :  { %419 = vmatprep.subr.bf16.mxu0 %v493_v2  ;;  %p446_p0 = scmp.ne.s32.totalorder %s326_s27, %s445_s28  ;;  %p451_p2 = scmp.lt.s32.totalorder %s445_s28, %s445_s28 }
  0x10   :  { %p452_p3 = por %p451_p2, %p450_p1 }
  0x11   :  { %421 = vmatpush3.bf16.msra.mxu0 %v420_v25 }
  0x12   :  { %422 = vmatprep.subr.bf16.mxu0 %v493_v2  ;;  %p453_p4 = pnand %p452_p3, %p446_p0 }
  0x15   :  { %424 = vmatpush3.bf16.msra.mxu0 %v423_v28 }
  0x16   :  { %425 = vmatprep.subr.bf16.mxu0 %v493_v2 }
  0x19   :  { %427 = vmatpush3.bf16.msra.mxu0 %v426_v31 }
  0x1a   :  { %428 = vmatprep.subr.bf16.mxu0 %v493_v2 }
  0x1d   :  { %430 = vmatpush3.bf16.msra.mxu0 %v429_v34 }
  0x1e   :  { %431 = vmatprep.subr.bf16.mxu0 %v493_v2 }
  0x21   :  { %433 = vmatpush3.bf16.msra.mxu0 %v432_v37 }
  0x22   :  { %434 = vmatprep.subr.bf16.mxu0 %v493_v2 }
  0x25   :  { %436 = vmatpush3.bf16.msra.mxu0 %v435_v40 }
  0xda   :  { %v110_v19 = vpop.f32.mrb[0].mxu1 }
  0xdb   :  { %v111_v20 = vadd.f32 %v337_v18, %v110_v19  ;;  %v368_v21 = vpop.f32.mrb[1].mxu1 }
  0xdd   :  { %v114_v22 = vmax.f32 %v111_v20, 0.0 }
  0xdf   :  { %341 = vmatmul.mubr.msk.f32.vlgmr.msra.gmra.mrb[2].mxu1 %vm131_vm5, %v114_v22 }
 0x1b2   :  { %v208_v48 = vpop.f32.mrb[2].mxu1 }
 0x1b3   :  { %v209_v49 = vadd.f32 %v208_v48, %v124_v46  ;;  %v210_v50 = vpop.f32.mrb[3].mxu1 }
 0x1b4   :  { %v211_v51 = vadd.f32 %v210_v50, %v128_v47 }
 0x1b5   :  { %307 = vst [vmem:[#allocation4] sm:$0xff] %v209_v49 }
 0x1b6   :  { %v214_v52 = vmul.f32 0.5, %v211_v51  ;;  %308 = vst [vmem:[#allocation4 + $0x8] sm:$0xff] %v211_v51 }
 0x1b8   :  { %v215_v53 = vmul.f32 1.442695, %v214_v52 }
 0x1ba   :  { %443 = vpow2.f32 %v215_v53 }
 0x1c4   :  { %v444_v55 = vpop.eup %443 }
 0x1c5   :  { %v217_v56 = vmul.f32 %v444_v55, %v213_v54 }
 0x1c7   :  { %v218_v57 = vadd.f32 %v217_v56, %v209_v49 }
 0x1c9   :  { %v219_v58 = vmax.f32 %v218_v57, 0.0 }
 0x1cb   :  { %402 = vmatmul.mubr.f32.vlgmr.msra.gmra.mrb[0].mxu0 %v219_v58 }
 0x1cc   :  { %456 = shalt.err (!%p453_p4)
}
 0x1cd   :  { %s457_s2 = scalar_lea.hbm %s665_s8, 256 }
 0x1ce   :  { %p458_p5 = scmp.ne.s32.totalorder %s665_s8, %s457_s2  ;;  %p461_p6 = scmp.lt.u32.totalorder %s457_s2, %s665_s8 }
 0x1d0   :  { %p463_p7 = pnand %p461_p6, %p458_p5 }
 0x1d2   :  { %466 = shalt.err (!%p463_p7)
}
 0x1d3   :  { %328 = dma.vmem_to_hbm [thread:$0]  %s326_s27, 256, %s665_s8, [#allocation5]  }
 0x1d4   :  { %s498_s13 = smov [#allocation2]  }
 0x1d5   :  { %s315_s14 = sshll.u32 %s498_s13, 4  ;;  %s316_s14 = int_to_ptr.vmem [resolvable:$true] %s315_s14 }
 0x1d6   :  { %s467_s15 = scalar_lea.vmem %s316_s14, 128  ;;  %p472_p9 = scmp.lt.s32.totalorder %s316_s14, %s316_s14 }
 0x1d7   :  { %p468_p8 = scmp.ne.s32.totalorder %s316_s14, %s467_s15  ;;  %p473_p10 = scmp.lt.s32.totalorder %s467_s15, %s467_s15 }
 0x1d9   :  { %p474_p11 = por %p473_p10, %p472_p9 }
 0x1db   :  { %p475_p12 = pnand %p474_p11, %p468_p8 }
 0x29e   :  { %v302_v59 = vpop.f32.mrb[0].mxu0 }
 0x29f   :  { %306 = vst.msk [vmem:[#allocation2] sm:$0xff] %vm40_vm1, %v302_v59  ;;  %v403_v60 = vpop.f32.mrb[1].mxu0 }
 0x2a0   :  { %478 = shalt.err (!%p475_p12)
}
 0x2a1   :  { %s479_s17 = scalar_lea.hbm %s664_s7, 128 }
 0x2a2   :  { %p480_p13 = scmp.ne.s32.totalorder %s664_s7, %s479_s17  ;;  %p483_p0 = scmp.lt.u32.totalorder %s479_s17, %s664_s7 }
 0x2a4   :  { %p485_p1 = pnand %p483_p0, %p480_p13 }
 0x2a6   :  { %488 = shalt.err (!%p485_p1)
}
 0x2a7   :  { %318 = dma.vmem_to_hbm [thread:$0]  %s316_s14, 128, %s664_s7, [#allocation3]  }
 0x2a8   :  { %489 = dma.done.wait [#allocation3], 128  }
 0x2a9   :  { %490 = vsyncadd [#allocation3], 4294967168 }
 0x2aa   :  { %491 = dma.done.wait [#allocation5], 256  }
 0x2ab   :  { %492 = vsyncadd [#allocation5], 4294967040 }
 0x2ac   :  { %335 = vsyncpa [#allocation3], 1 }
 0x2ad   :  { %336 = vsyncpa [#allocation5], 1 }

</bundles_post_ra>
